<compile_context>
chip_gen: v7x
topology: tpu7x:2x2x1
jax: 0.10.0
libtpu: 0.0.40
codegen_flags: <defaults>
</compile_context>

<pallas_src>
import functools

import jax
import jax.numpy as jnp
from jax.experimental import pallas as pl
from jax.experimental.pallas import tpu as pltpu


def _gates_pool_kernel(
    CH, K, P, LP, KP, SP, PP,
    # inputs (per batch element; leading batch dim squeezed by BlockSpec)
    x_ref, h_ref, c_ref, w_ref, b_ref, wci_ref, wcf_ref, wco_ref,
    # outputs
    ch_ref, cc_ref, pool_ref,
):
    x = x_ref[...]                                   # (L, CIN)  f32
    h = h_ref[...]                                   # (L, CH)   f32
    c = c_ref[...]                                   # (L, CH)   f32
    L = x.shape[0]

    # ---- fused im2col over {x, h} channels and the K taps (in-kernel halo pad) ----
    xh = jnp.concatenate([x, h], axis=-1)            # (L, CIN+CH)
    if P > 0:
        zpad = jnp.zeros((P, xh.shape[-1]), xh.dtype)
        xh_pad = jnp.concatenate([zpad, xh, zpad], axis=0)   # (L+2P, CIN+CH)
    else:
        xh_pad = xh
    taps = [xh_pad[k:k + L, :] for k in range(K)]    # shifted tap slices, computed once
    lhs = jnp.concatenate(taps, axis=-1)             # (L, K*(CIN+CH))

    # ---- one lane-dense MXU matmul = all 8 convolutions at once -------------------
    gates = jnp.dot(lhs.astype(jnp.bfloat16), w_ref[...],    # w_ref is bf16
                    preferred_element_type=jnp.float32)      # (L, 4*CH = 128) f32
    gates = gates + b_ref[...]                                # packed x-conv biases

    i_g = gates[:, 0 * CH:1 * CH]
    f_g = gates[:, 1 * CH:2 * CH]
    g_g = gates[:, 2 * CH:3 * CH]
    o_g = gates[:, 3 * CH:4 * CH]

    # ---- LSTM gate elementwise math (f32 on VPU/EUP) -------------------------------
    ci = jax.nn.sigmoid(i_g + c * wci_ref[...])
    cf = jax.nn.sigmoid(f_g + c * wcf_ref[...])
    cc = cf * c + ci * jnp.tanh(g_g)
    co = jax.nn.sigmoid(o_g + cc * wco_ref[...])
    ch = co * jnp.tanh(cc)

    ch_ref[...] = ch
    cc_ref[...] = cc

    # ---- MaxPool1d(KP, SP, PP): shifted maxima (VPU) + stride-SP subsample ---------
    # PyTorch pads with -inf; each real window always overlaps valid data (KP > PP).
    span = LP * SP
    pr = span + KP - 1 - PP - L                      # right halo so all shifts are valid
    parts = []
    if PP > 0:
        parts.append(jnp.full((PP, CH), -jnp.inf, ch.dtype))
    parts.append(ch)
    if pr > 0:
        parts.append(jnp.full((pr, CH), -jnp.inf, ch.dtype))
    ch_pad = jnp.concatenate(parts, axis=0) if len(parts) > 1 else ch

    m = ch_pad[0:span, :]
    for t in range(1, KP):                           # KP-1 elementwise maxima (VPU)
        m = jnp.maximum(m, ch_pad[t:t + span, :])    # m[l] = max over window starting at l
    pool_ref[...] = m.reshape(LP, SP, CH)[:, 0, :]   # keep only l = j*SP positions


def _batchnorm_kernel(EPS, pooled_ref, gamma_ref, beta_ref, out_ref):
    # BatchNorm1d, training-mode forward: biased batch statistics over (B, LP).
    pooled = pooled_ref[...]                         # (B, LP, CH) f32
    n = float(pooled.shape[0] * pooled.shape[1])
    mean = jnp.sum(pooled, axis=(0, 1), keepdims=True) / n
    diff = pooled - mean
    var = jnp.sum(diff * diff, axis=(0, 1), keepdims=True) / n
    inv = jax.lax.rsqrt(var + EPS)
    out_ref[...] = diff * inv * gamma_ref[...] + beta_ref[...]


def conv_lstm_cell_forward(x, h, c, params, *, kernel_size=3,
                           kernel_size_pool=8, stride_pool=4, eps=1e-5):
    """x: (B, Cin, L); h, c: (B, CH, L) (PyTorch NCL). Returns (ch_pool, ch, cc) in NCL."""
    B, CIN, L = x.shape
    CH = h.shape[1]
    K = kernel_size
    P = (K - 1) // 2
    KP, SP = kernel_size_pool, stride_pool
    PP = (kernel_size_pool - 1) // 2
    LP = (L + 2 * PP - KP) // SP + 1
    C4 = 4 * CH
    CIO = CIN + CH

    # NCL -> (B, L, C) layout glue (channels on the lane dim). No HBM padding passes.
    xt = jnp.transpose(x, (0, 2, 1)).astype(jnp.float32)
    ht = jnp.transpose(h, (0, 2, 1)).astype(jnp.float32)
    ct = jnp.transpose(c, (0, 2, 1)).astype(jnp.float32)

    p = params
    # Pack all 8 conv weights into one (K*(CIN+CH), 4*CH) bf16 matrix. Row order
    # matches the in-kernel im2col: tap-major, [x-channels | h-channels] per tap.
    rows = []
    for k in range(K):
        wx = jnp.concatenate([p["wxi"][k], p["wxf"][k], p["wxc"][k], p["wxo"][k]], axis=1)
        wh = jnp.concatenate([p["whi"][k], p["whf"][k], p["whc"][k], p["who"][k]], axis=1)
        rows.append(jnp.concatenate([wx, wh], axis=0))          # (CIN+CH, 4*CH)
    w_packed = jnp.concatenate(rows, axis=0).astype(jnp.bfloat16)   # (K*(CIN+CH), 4*CH)
    b_packed = jnp.concatenate(
        [p["bxi"], p["bxf"], p["bxc"], p["bxo"]]).reshape(1, C4).astype(jnp.float32)

    gamma = p["gamma"].reshape(1, CH).astype(jnp.float32)
    beta = p["beta"].reshape(1, CH).astype(jnp.float32)

    batch_map3 = lambda b: (b, 0, 0)
    bcast_map3 = lambda b: (0, 0, 0)
    bcast_map2 = lambda b: (0, 0)

    flops = 2 * B * L * (K * CIO) * C4 + 30 * B * L * CH
    transcendentals = 5 * B * L * CH
    bytes_accessed = (4 * (xt.size + ht.size + ct.size + b_packed.size
                           + 3 * L * CH + 2 * B * L * CH + B * LP * CH)
                      + 2 * w_packed.size)

    kernel = functools.partial(_gates_pool_kernel, CH, K, P, LP, KP, SP, PP)
    ch_t, cc_t, pooled = pl.pallas_call(
        kernel,
        grid=(B,),
        in_specs=[
            pl.BlockSpec((None, L, CIN), batch_map3),   # x
            pl.BlockSpec((None, L, CH), batch_map3),    # h
            pl.BlockSpec((None, L, CH), batch_map3),    # c
            pl.BlockSpec((K * CIO, C4), bcast_map2),    # packed conv weights (bf16)
            pl.BlockSpec((1, C4), bcast_map2),          # packed x-conv biases
            pl.BlockSpec((None, L, CH), bcast_map3),    # Wci
            pl.BlockSpec((None, L, CH), bcast_map3),    # Wcf
            pl.BlockSpec((None, L, CH), bcast_map3),    # Wco
        ],
        out_specs=(
            pl.BlockSpec((None, L, CH), batch_map3),    # ch
            pl.BlockSpec((None, L, CH), batch_map3),    # cc
            pl.BlockSpec((None, LP, CH), batch_map3),   # max-pooled ch (pre-BN)
        ),
        out_shape=(
            jax.ShapeDtypeStruct((B, L, CH), jnp.float32),
            jax.ShapeDtypeStruct((B, L, CH), jnp.float32),
            jax.ShapeDtypeStruct((B, LP, CH), jnp.float32),
        ),
        compiler_params=pltpu.CompilerParams(
            dimension_semantics=("parallel",),          # batch shards across v7x's 2 TCs
            vmem_limit_bytes=32 * 1024 * 1024,
        ),
        cost_estimate=pl.CostEstimate(flops=flops, transcendentals=transcendentals,
                                      bytes_accessed=bytes_accessed),
    )(xt, ht, ct, w_packed, b_packed, p["wci"], p["wcf"], p["wco"])

    # BatchNorm couples the whole batch -> tiny second (grid-less) kernel.
    vmem = pl.BlockSpec(memory_space=pltpu.MemorySpace.VMEM)
    pool_t = pl.pallas_call(
        functools.partial(_batchnorm_kernel, float(eps)),
        out_shape=jax.ShapeDtypeStruct((B, LP, CH), jnp.float32),
        in_specs=[vmem, vmem, vmem],
        out_specs=vmem,
    )(pooled, gamma, beta)

    # back to NCL
    return (jnp.transpose(pool_t, (0, 2, 1)),
            jnp.transpose(ch_t, (0, 2, 1)),
            jnp.transpose(cc_t, (0, 2, 1)))


def reference_forward(x, h, c, p, *, kernel_size=3, kernel_size_pool=8,
                      stride_pool=4, eps=1e-5, matmul_dtype=jnp.float32):
    """Pure-JAX reference matching the PyTorch forward (NCL layout).

    matmul_dtype=jnp.bfloat16 reproduces the kernel's bf16 MXU-input rounding
    (accumulation stays f32), allowing a tight numerical comparison.
    """
    K = kernel_size
    P = (K - 1) // 2
    KP, SP = kernel_size_pool, stride_pool
    PP = (kernel_size_pool - 1) // 2

    def cast(a):
        return a.astype(matmul_dtype).astype(jnp.float32)

    def conv1d(inp, w, b=None):
        w_oik = jnp.transpose(cast(w), (2, 1, 0))             # (K, Cin, Cout) -> (Cout, Cin, K)
        out = jax.lax.conv_general_dilated(
            cast(inp), w_oik, window_strides=(1,), padding=[(P, P)],
            dimension_numbers=("NCH", "OIH", "NCH"))
        if b is not None:
            out = out + b.reshape(1, -1, 1)
        return out

    wci = jnp.transpose(p["wci"], (0, 2, 1))                  # (1, CH, L)
    wcf = jnp.transpose(p["wcf"], (0, 2, 1))
    wco = jnp.transpose(p["wco"], (0, 2, 1))

    ci = jax.nn.sigmoid(conv1d(x, p["wxi"], p["bxi"]) + conv1d(h, p["whi"]) + c * wci)
    cf = jax.nn.sigmoid(conv1d(x, p["wxf"], p["bxf"]) + conv1d(h, p["whf"]) + c * wcf)
    cc = cf * c + ci * jnp.tanh(conv1d(x, p["wxc"], p["bxc"]) + conv1d(h, p["whc"]))
    co = jax.nn.sigmoid(conv1d(x, p["wxo"], p["bxo"]) + conv1d(h, p["who"]) + cc * wco)
    ch = co * jnp.tanh(cc)

    pooled = jax.lax.reduce_window(
        ch, -jnp.inf, jax.lax.max,
        window_dimensions=(1, 1, KP), window_strides=(1, 1, SP),
        padding=((0, 0), (0, 0), (PP, PP)))

    mean = jnp.mean(pooled, axis=(0, 2), keepdims=True)
    var = jnp.mean((pooled - mean) ** 2, axis=(0, 2), keepdims=True)
    pooled_bn = ((pooled - mean) * jax.lax.rsqrt(var + eps)
                 * p["gamma"].reshape(1, -1, 1) + p["beta"].reshape(1, -1, 1))
    return pooled_bn, ch, cc


def make_params(key, input_channels, hidden_channels, kernel_size, length):
    """Deterministic synthetic parameters (shapes per the module's __init__/init_hidden)."""
    K, CIN, CH, L = kernel_size, input_channels, hidden_channels, length
    ks = jax.random.split(key, 16)
    s = 0.1
    p = {
        # conv weights stored in kernel layout (K, Cin, Cout)
        "wxi": jax.random.normal(ks[0], (K, CIN, CH), jnp.float32) * s,
        "whi": jax.random.normal(ks[1], (K, CH, CH), jnp.float32) * s,
        "wxf": jax.random.normal(ks[2], (K, CIN, CH), jnp.float32) * s,
        "whf": jax.random.normal(ks[3], (K, CH, CH), jnp.float32) * s,
        "wxc": jax.random.normal(ks[4], (K, CIN, CH), jnp.float32) * s,
        "whc": jax.random.normal(ks[5], (K, CH, CH), jnp.float32) * s,
        "wxo": jax.random.normal(ks[6], (K, CIN, CH), jnp.float32) * s,
        "who": jax.random.normal(ks[7], (K, CH, CH), jnp.float32) * s,
        # x-conv biases (bias=True only on the Wx* convs)
        "bxi": jax.random.normal(ks[8], (CH,), jnp.float32) * s,
        "bxf": jax.random.normal(ks[9], (CH,), jnp.float32) * s,
        "bxc": jax.random.normal(ks[10], (CH,), jnp.float32) * s,
        "bxo": jax.random.normal(ks[11], (CH,), jnp.float32) * s,
        # peephole weights (PyTorch shape (1, CH, L); stored here as (1, L, CH))
        "wci": jax.random.normal(ks[12], (1, L, CH), jnp.float32) * s,
        "wcf": jax.random.normal(ks[13], (1, L, CH), jnp.float32) * s,
        "wco": jax.random.normal(ks[14], (1, L, CH), jnp.float32) * s,
        # BatchNorm1d affine params (PyTorch init: weight=1, bias=0)
        "gamma": jnp.ones((CH,), jnp.float32),
        "beta": jnp.zeros((CH,), jnp.float32),
    }
    return p


if __name__ == "__main__":
    B, CIN, CH, L = 2, 4, 32, 16
    K = 3

    key = jax.random.PRNGKey(0)
    kx, kh, kc, kp = jax.random.split(key, 4)
    x = jax.random.normal(kx, (B, CIN, L), jnp.float32)   # NCL, as in PyTorch Conv1d
    h = jax.random.normal(kh, (B, CH, L), jnp.float32)
    c = jax.random.normal(kc, (B, CH, L), jnp.float32)
    params = make_params(kp, CIN, CH, K, L)

    ch_pool, ch_out, cc_out = conv_lstm_cell_forward(x, h, c, params, kernel_size=K)
    jax.block_until_ready((ch_pool, ch_out, cc_out))

    # Tight check vs. a reference that applies the same bf16 MXU-input rounding.
    ref_pool, ref_ch, ref_cc = reference_forward(x, h, c, params, kernel_size=K,
                                                 matmul_dtype=jnp.bfloat16)
    # Loose sanity check vs. the pure-f32 reference (bf16 rounding is the only delta).
    f32_pool, f32_ch, f32_cc = reference_forward(x, h, c, params, kernel_size=K)
    jax.block_until_ready((ref_pool, ref_ch, ref_cc, f32_pool, f32_ch, f32_cc))

    assert ch_pool.shape == ref_pool.shape == (B, CH, 4)
    assert ch_out.shape == cc_out.shape == (B, CH, L)
    assert jnp.allclose(ch_pool, ref_pool, atol=2e-3, rtol=2e-3)
    assert jnp.allclose(ch_out, ref_ch, atol=2e-3, rtol=2e-3)
    assert jnp.allclose(cc_out, ref_cc, atol=2e-3, rtol=2e-3)
    assert jnp.allclose(ch_out, f32_ch, atol=1.5e-1, rtol=1.5e-1)
    assert jnp.allclose(cc_out, f32_cc, atol=1.5e-1, rtol=1.5e-1)

    print("KERNEL_OK")
</pallas_src>

<mosaic_0001>
module attributes {stable_mosaic.version = 11 : i64} {
  func.func @_gates_pool_kernel(%arg0: i32, %arg1: memref<1x16x4xf32, #tpu.memory_space<vmem>>, %arg2: memref<1x16x32xf32, #tpu.memory_space<vmem>>, %arg3: memref<1x16x32xf32, #tpu.memory_space<vmem>>, %arg4: memref<108x128xbf16, #tpu.memory_space<vmem>>, %arg5: memref<1x128xf32, #tpu.memory_space<vmem>>, %arg6: memref<1x16x32xf32, #tpu.memory_space<vmem>>, %arg7: memref<1x16x32xf32, #tpu.memory_space<vmem>>, %arg8: memref<1x16x32xf32, #tpu.memory_space<vmem>>, %arg9: memref<1x16x32xf32, #tpu.memory_space<vmem>>, %arg10: memref<1x16x32xf32, #tpu.memory_space<vmem>>, %arg11: memref<1x4x32xf32, #tpu.memory_space<vmem>>) attributes {dimension_semantics = [#tpu.dimension_semantics<parallel>], iteration_bounds = array<i64: 2>, scalar_prefetch = 0 : i64, scratch_operands = 0 : i64, tpu.core_type = #tpu.core_type<tc>, window_params = [{transform_indices = @transform_0, window_bounds = array<i64: 1, 16, 4>}, {transform_indices = @transform_1, window_bounds = array<i64: 1, 16, 32>}, {transform_indices = @transform_2, window_bounds = array<i64: 1, 16, 32>}, {pipeline_mode = #tpu.pipeline_mode<synchronous>, transform_indices = @transform_3, window_bounds = array<i64: 108, 128>}, {pipeline_mode = #tpu.pipeline_mode<synchronous>, transform_indices = @transform_4, window_bounds = array<i64: 1, 128>}, {pipeline_mode = #tpu.pipeline_mode<synchronous>, transform_indices = @transform_5, window_bounds = array<i64: 1, 16, 32>}, {pipeline_mode = #tpu.pipeline_mode<synchronous>, transform_indices = @transform_6, window_bounds = array<i64: 1, 16, 32>}, {pipeline_mode = #tpu.pipeline_mode<synchronous>, transform_indices = @transform_7, window_bounds = array<i64: 1, 16, 32>}, {transform_indices = @transform_8, window_bounds = array<i64: 1, 16, 32>}, {transform_indices = @transform_9, window_bounds = array<i64: 1, 16, 32>}, {transform_indices = @transform_10, window_bounds = array<i64: 1, 4, 32>}]} {
    %c0 = arith.constant 0 : index
    %c0_0 = arith.constant 0 : index
    %c0_1 = arith.constant 0 : index
    %0 = vector.load %arg1[%c0, %c0_0, %c0_1] : memref<1x16x4xf32, #tpu.memory_space<vmem>>, vector<1x16x4xf32>
    %1 = vector.shape_cast %0 : vector<1x16x4xf32> to vector<16x4xf32>
    %c0_2 = arith.constant 0 : index
    %c0_3 = arith.constant 0 : index
    %c0_4 = arith.constant 0 : index
    %2 = vector.load %arg2[%c0_2, %c0_3, %c0_4] : memref<1x16x32xf32, #tpu.memory_space<vmem>>, vector<1x16x32xf32>
    %3 = vector.shape_cast %2 : vector<1x16x32xf32> to vector<16x32xf32>
    %c0_5 = arith.constant 0 : index
    %c0_6 = arith.constant 0 : index
    %c0_7 = arith.constant 0 : index
    %4 = vector.load %arg3[%c0_5, %c0_6, %c0_7] : memref<1x16x32xf32, #tpu.memory_space<vmem>>, vector<1x16x32xf32>
    %5 = vector.shape_cast %4 : vector<1x16x32xf32> to vector<16x32xf32>
    %6 = tpu.concatenate %1, %3 in 1 : vector<16x4xf32>, vector<16x32xf32> -> vector<16x36xf32>
    %cst = arith.constant 0.000000e+00 : f32
    %7 = vector.broadcast %cst : f32 to vector<1x36xf32>
    %8 = tpu.concatenate %7, %6, %7 in 0 : vector<1x36xf32>, vector<16x36xf32>, vector<1x36xf32> -> vector<18x36xf32>
    %9 = vector.extract_strided_slice %8 {offsets = [0, 0], sizes = [16, 36], strides = [1, 1]} : vector<18x36xf32> to vector<16x36xf32>
    %10 = vector.extract_strided_slice %8 {offsets = [1, 0], sizes = [16, 36], strides = [1, 1]} : vector<18x36xf32> to vector<16x36xf32>
    %11 = vector.extract_strided_slice %8 {offsets = [2, 0], sizes = [16, 36], strides = [1, 1]} : vector<18x36xf32> to vector<16x36xf32>
    %12 = tpu.concatenate %9, %10, %11 in 1 : vector<16x36xf32>, vector<16x36xf32>, vector<16x36xf32> -> vector<16x108xf32>
    %13 = arith.truncf %12 : vector<16x108xf32> to vector<16x108xbf16>
    %c0_8 = arith.constant 0 : index
    %c0_9 = arith.constant 0 : index
    %14 = vector.load %arg4[%c0_8, %c0_9] : memref<108x128xbf16, #tpu.memory_space<vmem>>, vector<108x128xbf16>
    %cst_10 = arith.constant dense<0.000000e+00> : vector<16x128xf32>
    %15 = tpu.matmul %13, %14, %cst_10 {dimension_numbers = #tpu.dot_dimension_numbers<[1], [0], [0], [1], [0, 0, 1, 1], [], []>} : vector<16x108xbf16>, vector<108x128xbf16>, vector<16x128xf32> -> vector<16x128xf32>
    %c0_11 = arith.constant 0 : index
    %c0_12 = arith.constant 0 : index
    %16 = vector.load %arg5[%c0_11, %c0_12] : memref<1x128xf32, #tpu.memory_space<vmem>>, vector<1x128xf32>
    %17 = vector.broadcast %16 : vector<1x128xf32> to vector<16x128xf32>
    %18 = arith.addf %15, %17 : vector<16x128xf32>
    %19 = vector.extract_strided_slice %18 {offsets = [0, 0], sizes = [16, 32], strides = [1, 1]} : vector<16x128xf32> to vector<16x32xf32>
    %20 = vector.extract_strided_slice %18 {offsets = [0, 32], sizes = [16, 32], strides = [1, 1]} : vector<16x128xf32> to vector<16x32xf32>
    %21 = vector.extract_strided_slice %18 {offsets = [0, 64], sizes = [16, 32], strides = [1, 1]} : vector<16x128xf32> to vector<16x32xf32>
    %22 = vector.extract_strided_slice %18 {offsets = [0, 96], sizes = [16, 32], strides = [1, 1]} : vector<16x128xf32> to vector<16x32xf32>
    %c0_13 = arith.constant 0 : index
    %c0_14 = arith.constant 0 : index
    %c0_15 = arith.constant 0 : index
    %23 = vector.load %arg6[%c0_13, %c0_14, %c0_15] : memref<1x16x32xf32, #tpu.memory_space<vmem>>, vector<1x16x32xf32>
    %24 = vector.shape_cast %23 : vector<1x16x32xf32> to vector<16x32xf32>
    %25 = arith.mulf %5, %24 : vector<16x32xf32>
    %26 = arith.addf %19, %25 : vector<16x32xf32>
    %27 = arith.negf %26 : vector<16x32xf32>
    %28 = math.exp %27 : vector<16x32xf32>
    %cst_16 = arith.constant 1.000000e+00 : f32
    %29 = vector.broadcast %cst_16 : f32 to vector<16x32xf32>
    %30 = arith.addf %29, %28 : vector<16x32xf32>
    %31 = arith.divf %29, %30 : vector<16x32xf32>
    %c0_17 = arith.constant 0 : index
    %c0_18 = arith.constant 0 : index
    %c0_19 = arith.constant 0 : index
    %32 = vector.load %arg7[%c0_17, %c0_18, %c0_19] : memref<1x16x32xf32, #tpu.memory_space<vmem>>, vector<1x16x32xf32>
    %33 = vector.shape_cast %32 : vector<1x16x32xf32> to vector<16x32xf32>
    %34 = arith.mulf %5, %33 : vector<16x32xf32>
    %35 = arith.addf %20, %34 : vector<16x32xf32>
    %36 = arith.negf %35 : vector<16x32xf32>
    %37 = math.exp %36 : vector<16x32xf32>
    %cst_20 = arith.constant 1.000000e+00 : f32
    %38 = vector.broadcast %cst_20 : f32 to vector<16x32xf32>
    %39 = arith.addf %38, %37 : vector<16x32xf32>
    %40 = arith.divf %38, %39 : vector<16x32xf32>
    %41 = arith.mulf %40, %5 : vector<16x32xf32>
    %42 = math.tanh %21 : vector<16x32xf32>
    %43 = arith.mulf %31, %42 : vector<16x32xf32>
    %44 = arith.addf %41, %43 : vector<16x32xf32>
    %c0_21 = arith.constant 0 : index
    %c0_22 = arith.constant 0 : index
    %c0_23 = arith.constant 0 : index
    %45 = vector.load %arg8[%c0_21, %c0_22, %c0_23] : memref<1x16x32xf32, #tpu.memory_space<vmem>>, vector<1x16x32xf32>
    %46 = vector.shape_cast %45 : vector<1x16x32xf32> to vector<16x32xf32>
    %47 = arith.mulf %44, %46 : vector<16x32xf32>
    %48 = arith.addf %22, %47 : vector<16x32xf32>
    %49 = arith.negf %48 : vector<16x32xf32>
    %50 = math.exp %49 : vector<16x32xf32>
    %cst_24 = arith.constant 1.000000e+00 : f32
    %51 = vector.broadcast %cst_24 : f32 to vector<16x32xf32>
    %52 = arith.addf %51, %50 : vector<16x32xf32>
    %53 = arith.divf %51, %52 : vector<16x32xf32>
    %54 = math.tanh %44 : vector<16x32xf32>
    %55 = arith.mulf %53, %54 : vector<16x32xf32>
    %c0_25 = arith.constant 0 : index
    %c0_26 = arith.constant 0 : index
    %c0_27 = arith.constant 0 : index
    %56 = vector.load %arg9[%c0_25, %c0_26, %c0_27] : memref<1x16x32xf32, #tpu.memory_space<vmem>>, vector<1x16x32xf32>
    %57 = vector.shape_cast %56 : vector<1x16x32xf32> to vector<16x32xf32>
    %58 = vector.shape_cast %55 : vector<16x32xf32> to vector<1x16x32xf32>
    tpu.vector_store %arg9[%c0_25, %c0_26, %c0_27], %58 {strides = array<i32>} : memref<1x16x32xf32, #tpu.memory_space<vmem>>, vector<1x16x32xf32>,
    %c0_28 = arith.constant 0 : index
    %c0_29 = arith.constant 0 : index
    %c0_30 = arith.constant 0 : index
    %59 = vector.load %arg10[%c0_28, %c0_29, %c0_30] : memref<1x16x32xf32, #tpu.memory_space<vmem>>, vector<1x16x32xf32>
    %60 = vector.shape_cast %59 : vector<1x16x32xf32> to vector<16x32xf32>
    %61 = vector.shape_cast %44 : vector<16x32xf32> to vector<1x16x32xf32>
    tpu.vector_store %arg10[%c0_28, %c0_29, %c0_30], %61 {strides = array<i32>} : memref<1x16x32xf32, #tpu.memory_space<vmem>>, vector<1x16x32xf32>,
    %cst_31 = arith.constant 0xFF800000 : f32
    %62 = vector.broadcast %cst_31 : f32 to vector<3x32xf32>
    %cst_32 = arith.constant 0xFF800000 : f32
    %63 = vector.broadcast %cst_32 : f32 to vector<4x32xf32>
    %64 = tpu.concatenate %62, %55, %63 in 0 : vector<3x32xf32>, vector<16x32xf32>, vector<4x32xf32> -> vector<23x32xf32>
    %65 = vector.extract_strided_slice %64 {offsets = [0, 0], sizes = [16, 32], strides = [1, 1]} : vector<23x32xf32> to vector<16x32xf32>
    %66 = vector.extract_strided_slice %64 {offsets = [1, 0], sizes = [16, 32], strides = [1, 1]} : vector<23x32xf32> to vector<16x32xf32>
    %67 = arith.maximumf %65, %66 : vector<16x32xf32>
    %68 = vector.extract_strided_slice %64 {offsets = [2, 0], sizes = [16, 32], strides = [1, 1]} : vector<23x32xf32> to vector<16x32xf32>
    %69 = arith.maximumf %67, %68 : vector<16x32xf32>
    %70 = vector.extract_strided_slice %64 {offsets = [3, 0], sizes = [16, 32], strides = [1, 1]} : vector<23x32xf32> to vector<16x32xf32>
    %71 = arith.maximumf %69, %70 : vector<16x32xf32>
    %72 = vector.extract_strided_slice %64 {offsets = [4, 0], sizes = [16, 32], strides = [1, 1]} : vector<23x32xf32> to vector<16x32xf32>
    %73 = arith.maximumf %71, %72 : vector<16x32xf32>
    %74 = vector.extract_strided_slice %64 {offsets = [5, 0], sizes = [16, 32], strides = [1, 1]} : vector<23x32xf32> to vector<16x32xf32>
    %75 = arith.maximumf %73, %74 : vector<16x32xf32>
    %76 = vector.extract_strided_slice %64 {offsets = [6, 0], sizes = [16, 32], strides = [1, 1]} : vector<23x32xf32> to vector<16x32xf32>
    %77 = arith.maximumf %75, %76 : vector<16x32xf32>
    %78 = vector.extract_strided_slice %64 {offsets = [7, 0], sizes = [16, 32], strides = [1, 1]} : vector<23x32xf32> to vector<16x32xf32>
    %79 = arith.maximumf %77, %78 : vector<16x32xf32>
    %80 = vector.shape_cast %79 : vector<16x32xf32> to vector<4x4x32xf32>
    %81 = vector.extract_strided_slice %80 {offsets = [0, 0, 0], sizes = [4, 1, 32], strides = [1, 1, 1]} : vector<4x4x32xf32> to vector<4x1x32xf32>
    %82 = vector.shape_cast %81 : vector<4x1x32xf32> to vector<4x32xf32>
    %c0_33 = arith.constant 0 : index
    %c0_34 = arith.constant 0 : index
    %c0_35 = arith.constant 0 : index
    %83 = vector.load %arg11[%c0_33, %c0_34, %c0_35] : memref<1x4x32xf32, #tpu.memory_space<vmem>>, vector<1x4x32xf32>
    %84 = vector.shape_cast %83 : vector<1x4x32xf32> to vector<4x32xf32>
    %85 = vector.shape_cast %82 : vector<4x32xf32> to vector<1x4x32xf32>
    tpu.vector_store %arg11[%c0_33, %c0_34, %c0_35], %85 {strides = array<i32>} : memref<1x4x32xf32, #tpu.memory_space<vmem>>, vector<1x4x32xf32>,
    return
  }
  func.func @transform_0(%arg0: i32) -> (i32, i32, i32) {
    %c0_i32 = arith.constant 0 : i32
    %c0_i32_0 = arith.constant 0 : i32
    %c0_i32_1 = arith.constant 0 : i32
    return %arg0, %c0_i32, %c0_i32_0 : i32, i32, i32
  }
  func.func @transform_1(%arg0: i32) -> (i32, i32, i32) {
    %c0_i32 = arith.constant 0 : i32
    %c0_i32_0 = arith.constant 0 : i32
    %c0_i32_1 = arith.constant 0 : i32
    return %arg0, %c0_i32, %c0_i32_0 : i32, i32, i32
  }
  func.func @transform_2(%arg0: i32) -> (i32, i32, i32) {
    %c0_i32 = arith.constant 0 : i32
    %c0_i32_0 = arith.constant 0 : i32
    %c0_i32_1 = arith.constant 0 : i32
    return %arg0, %c0_i32, %c0_i32_0 : i32, i32, i32
  }
  func.func @transform_3(%arg0: i32) -> (i32, i32) {
    %c0_i32 = arith.constant 0 : i32
    %c0_i32_0 = arith.constant 0 : i32
    %c0_i32_1 = arith.constant 0 : i32
    return %c0_i32, %c0_i32_0 : i32, i32
  }
  func.func @transform_4(%arg0: i32) -> (i32, i32) {
    %c0_i32 = arith.constant 0 : i32
    %c0_i32_0 = arith.constant 0 : i32
    %c0_i32_1 = arith.constant 0 : i32
    return %c0_i32, %c0_i32_0 : i32, i32
  }
  func.func @transform_5(%arg0: i32) -> (i32, i32, i32) {
    %c0_i32 = arith.constant 0 : i32
    %c0_i32_0 = arith.constant 0 : i32
    %c0_i32_1 = arith.constant 0 : i32
    %c0_i32_2 = arith.constant 0 : i32
    return %c0_i32, %c0_i32_0, %c0_i32_1 : i32, i32, i32
  }
  func.func @transform_6(%arg0: i32) -> (i32, i32, i32) {
    %c0_i32 = arith.constant 0 : i32
    %c0_i32_0 = arith.constant 0 : i32
    %c0_i32_1 = arith.constant 0 : i32
    %c0_i32_2 = arith.constant 0 : i32
    return %c0_i32, %c0_i32_0, %c0_i32_1 : i32, i32, i32
  }
  func.func @transform_7(%arg0: i32) -> (i32, i32, i32) {
    %c0_i32 = arith.constant 0 : i32
    %c0_i32_0 = arith.constant 0 : i32
    %c0_i32_1 = arith.constant 0 : i32
    %c0_i32_2 = arith.constant 0 : i32
    return %c0_i32, %c0_i32_0, %c0_i32_1 : i32, i32, i32
  }
  func.func @transform_8(%arg0: i32) -> (i32, i32, i32) {
    %c0_i32 = arith.constant 0 : i32
    %c0_i32_0 = arith.constant 0 : i32
    %c0_i32_1 = arith.constant 0 : i32
    return %arg0, %c0_i32, %c0_i32_0 : i32, i32, i32
  }
  func.func @transform_9(%arg0: i32) -> (i32, i32, i32) {
    %c0_i32 = arith.constant 0 : i32
    %c0_i32_0 = arith.constant 0 : i32
    %c0_i32_1 = arith.constant 0 : i32
    return %arg0, %c0_i32, %c0_i32_0 : i32, i32, i32
  }
  func.func @transform_10(%arg0: i32) -> (i32, i32, i32) {
    %c0_i32 = arith.constant 0 : i32
    %c0_i32_0 = arith.constant 0 : i32
    %c0_i32_1 = arith.constant 0 : i32
    return %arg0, %c0_i32, %c0_i32_0 : i32, i32, i32
  }
}

</mosaic_0001>

<bundles_post_ra>
// kernel: tpu_custom_call.1
= control target key start
LH: loop header
LB: loop body
LE: loop exit
PB: predicated region body
PF: predicated region fallthrough
CT: control target
= control target key end

     0   :  { %s2096_s0 = inlined_call_operand.vmem [shape: f32[2,16,4], index: 0, kind: input, shape index: {}]   ;;  %s2097_s1 = inlined_call_operand.vmem [shape: f32[2,16,32], index: 1, kind: input, shape index: {}]   ;;  %s2098_s2 = inlined_call_operand.hbm [shape: f32[2,16,32], index: 2, kind: input, shape index: {}]   ;;  %s2099_s3 = inlined_call_operand.hbm [shape: bf16[108,128], index: 3, kind: input, shape index: {}]   ;;  %s2100_s4 = inlined_call_operand.vmem [shape: f32[1,128], index: 4, kind: input, shape index: {}]   ;;  %s2101_s5 = inlined_call_operand.vmem [shape: f32[1,16,32], index: 5, kind: input, shape index: {}]   ;;  %s2102_s6 = inlined_call_operand.hbm [shape: f32[1,16,32], index: 6, kind: input, shape index: {}]   ;;  %s2103_s7 = inlined_call_operand.vmem [shape: f32[1,16,32], index: 7, kind: input, shape index: {}]   ;;  %s2104_s8 = inlined_call_operand.hbm [shape: f32[2,16,32], index: 8, kind: output, shape index: {0}]   ;;  %s2105_s9 = inlined_call_operand.hbm [shape: f32[2,16,32], index: 9, kind: output, shape index: {1}]   ;;  %s2106_s10 = inlined_call_operand.hbm [shape: f32[2,4,32], index: 10, kind: output, shape index: {2}]  }
   0x1   :  { %2116 = sst [smem:[#allocation18_spill]] %s2096_s0 }
   0x2   :  { %16 = vsyncpa [#allocation3], 0 }
   0x3   :  { %18 = vsyncpa [#allocation3 + $0x1], 0 }
   0x4   :  { %19 = vsyncpa [#allocation6], 0 }
   0x5   :  { %20 = vsyncpa [#allocation4], 0 }
   0x6   :  { %22 = vsyncpa [#allocation4 + $0x1], 0 }
   0x7   :  { %23 = vsyncpa [#allocation10], 0 }
   0x8   :  { %25 = vsyncpa [#allocation10 + $0x1], 0  ;;  %s1635_s13 = smov 0   ;;  %s1637_s14 = smov 0  }
   0x9   :  { %s1639_s15 = smov 0   ;;  %s1641_s16 = smov 0  }
   0xa LB: > { %2117 = sst [smem:[#allocation16_spill]] %s1546_s13  ;;  %s1656_s17 = sadd.s32 4294967295, %s1558_s16   ;;  %s1558_s16 = sphi %s1641_s16, %s2143_s16   ;;  %s1554_s15 = sphi %s1639_s15, %s2142_s15   ;;  %s1550_s14 = sphi %s1637_s14, %s2141_s14   ;;  %s1546_s13 = sphi %s1635_s13, %s2140_s13  }
   0xb   : > { %s2108_s18 = sadd.s32 4294967294, %s1558_s16   ;;  %p103_p0 = scmp.ne.s32.totalorder %s1550_s14, %s1546_s13 }
   0xc   : > { %p2107_p1 = scmp.eq.s32.totalorder %s1656_s17, 0  ;;  %p238_p3 = scmp.eq.s32.totalorder %s2108_s18, 1 }
   0xd   : > { %p1123_p5 = scmp.ge.s32.totalorder %s1558_s16, 1  ;;  %p297_p7 = scmp.lt.s32.totalorder %s1558_s16, 3 }
   0xe   : > { %p1667_p4 = por %p2107_p1, %p103_p0  ;;  %p1672_p6 = por %p238_p3, %p103_p0 }
   0xf   : > { %p1677_p8 = pnand %p1123_p5, %p297_p7  ;;  %s1560_s22 = smov [#allocation5]  }
  0x10   : > { %s2118_s19 = scalar_select %p1667_p4, 1, 0 }
  0x11   : > { %s2119_s20 = scalar_select %p1672_p6, 1, 0 }
  0x12   : > { %s309_s23 = sshll.u32 %s1560_s22, 4  ;;  %p1213_p9 = pneg %p1677_p8  ;;  %s1681_s23 = int_to_ptr.vmem [resolvable:$true] %s309_s23 }
  0x13   : > { %2120 = sst [smem:[#allocation17_spill]] %s2119_s20  ;;  %s1561_s25 = smov [#allocation7]  }
  0x14   : > { %p1688_p11 = pnand %p1213_p9, %p2107_p1  ;;  %s328_s26 = sshll.u32 %s1561_s25, 4  ;;  %s1692_s26 = int_to_ptr.vmem [resolvable:$true] %s328_s26 }
  0x15   : > { %s1342_s29 = scalar_lea.hbm %s2099_s3, 896 }
  0x16   : > { %p1343_p12 = scmp.ne.s32.totalorder %s2099_s3, %s1342_s29  ;;  %p1344_p13 = pneg %p1688_p11 }
  0x17   : > { %p1349_p5 = scmp.lt.u32.totalorder %s1342_s29, %s2099_s3 }
  0x18   : > { %p1345_p0 = pnand %p1344_p13, %p1343_p12 }
  0x1a   : > { %p1346_p3 = pneg %p1345_p0 }
  0x1c   : > { %p1351_p7 = pnand %p1349_p5, %p1346_p3 }
  0x1e   : > { %1354 = shalt.err (!%p1351_p7)
}
  0x1f   : > { %s1355_s25 = scalar_lea.vmem %s1681_s23, 896  ;;  %p1363_p2 = scmp.lt.s32.totalorder %s1681_s23, %s1681_s23 }
  0x20   : > { %p1356_p9 = scmp.ne.s32.totalorder %s1681_s23, %s1355_s25  ;;  %p1364_p12 = scmp.lt.s32.totalorder %s1355_s25, %s1355_s25 }
  0x22   : > { %p1358_p10 = pnand %p1356_p9, %p1344_p13  ;;  %p1365_p0 = por %p1364_p12, %p1363_p2 }
  0x24   : > { %p1359_p1 = pneg %p1358_p10 }
  0x26   : > { %p1366_p6 = pnand %p1365_p0, %p1359_p1 }
  0x28   : > { %1369 = shalt.err (!%p1366_p6)
}
  0x29   : > { %s1562_s27 = smov 64   ;;  %s1563_s28 = smov 4  }
  0x2a   : > { %1216 = dma.hbm_to_vmem [thread:$0]  (!%p1688_p11), %s2099_s3, 896, %s1681_s23, [#allocation6], %s1562_s27, %s1562_s27, %s1563_s28  }
  0x2b   : > { %s1370_s22 = scalar_lea.hbm %s2102_s6, 256 }
  0x2c   : > { %p1371_p2 = scmp.ne.s32.totalorder %s2102_s6, %s1370_s22  ;;  %p1377_p10 = scmp.lt.u32.totalorder %s1370_s22, %s2102_s6 }
  0x2e   : > { %p1373_p1 = pnand %p1371_p2, %p1344_p13 }
  0x30   : > { %p1374_p6 = pneg %p1373_p1 }
  0x32   : > { %p1379_p3 = pnand %p1377_p10, %p1374_p6 }
  0x34   : > { %1382 = shalt.err (!%p1379_p3)
}
  0x35   : > { %s1383_s23 = scalar_lea.vmem %s1692_s26, 256  ;;  %p1391_p12 = scmp.lt.s32.totalorder %s1692_s26, %s1692_s26 }
  0x36   : > { %p1384_p5 = scmp.ne.s32.totalorder %s1692_s26, %s1383_s23  ;;  %p1392_p0 = scmp.lt.s32.totalorder %s1383_s23, %s1383_s23 }
  0x38   : > { %p1386_p7 = pnand %p1384_p5, %p1344_p13  ;;  %p1393_p2 = por %p1392_p0, %p1391_p12 }
  0x3a   : > { %p1387_p9 = pneg %p1386_p7 }
  0x3c   : > { %p1394_p1 = pnand %p1393_p2, %p1387_p9 }
  0x3e   : > { %1397 = shalt.err (!%p1394_p1)
}
  0x3f   : > { %s2111_s13 = smov 128   ;;  %s2112_s18 = smov 8  }
  0x40   : > { %1219 = dma.hbm_to_vmem [thread:$0]  (!%p1688_p11), %s2102_s6, 256, %s1692_s26, [#allocation6], %s2111_s13, %s2111_s13, %s2112_s18  }
  0x41   : > { %s1750_s28 = sadd.s32 1, %s1558_s16   ;;  %s90_s30 = sadd.s32 1, %s1554_s15 }
  0x42   : > { %s87_s29 = ssub.s32 %s1558_s16, %s1750_s28  ;;  %p97_p6 = scmp.ne.s32.totalorder %s1554_s15, %s1550_s14 }
  0x43   : > { %p88_p13 = scmp.eq.s32.totalorder %s87_s29, 0  ;;  %p98_p10 = scmp.eq.s32.totalorder %s1558_s16, 0 }
  0x44   : > { %p2123_p5 = scmp.eq.s32.totalorder %s1656_s17, 1  ;;  %p1236_p9 = scmp.lt.s32.totalorder %s1558_s16, 2 }
  0x45   : > { %s1759_s11 = scalar_select %p88_p13, %s1554_s15, %s90_s30  }
  0x46   : > { %p99_p3 = por %p98_p10, %p97_p6  ;;  %p1763_p7 = por %p2123_p5, %p97_p6 }
  0x47   : > { %s361_s12 = sand.u32 1, %s1554_s15   ;;  %s1166_s26 = sshll.u32 %s1558_s16, 8 }
  0x48   : > { %s2124_s24 = scalar_select %p1763_p7, 1, 0 }
  0x49   : > { %s1127_s22 = sshll.u32 %s361_s12, 4  ;;  %s1773_s20 = scalar_lea.hbm %s2098_s2, %s1166_s26 }
  0x4a   : > { %s365_s27 = scalar_lea.vmem [#allocation2], %s1127_s22  ;;  %p1777_p11 = pnand %p1236_p9, %p99_p3 }
  0x4b   : > { %s372_s29 = sshll.u32 %s365_s27, 4  ;;  %s1781_s13 = scalar_lea.sflag [#allocation3], %s361_s12  ;;  %s1775_s29 = int_to_ptr.vmem [resolvable:$true] %s372_s29 }
  0x4c   : > { %s1398_s18 = scalar_lea.hbm %s1773_s20, 256  ;;  %p1400_p0 = pneg %p1777_p11 }
  0x4d   : > { %p1399_p12 = scmp.ne.s32.totalorder %s1773_s20, %s1398_s18  ;;  %s1403_s25 = scalar_lea.hbm %s2098_s2, 512 }
  0x4e   : > { %p1404_p13 = scmp.lt.u32.totalorder %s1773_s20, %s2098_s2  ;;  %p1405_p6 = scmp.lt.u32.totalorder %s1403_s25, %s1398_s18 }
  0x4f   : > { %p1401_p2 = pnand %p1400_p0, %p1399_p12  ;;  %p1407_p3 = scmp.lt.u32.totalorder %s1398_s18, %s1773_s20 }
  0x50   : > { %p1406_p10 = por %p1405_p6, %p1404_p13 }
  0x51   : > { %p1402_p1 = pneg %p1401_p2 }
  0x52   : > { %p1408_p5 = por %p1407_p3, %p1406_p10 }
  0x54   : > { %p1409_p9 = pnand %p1408_p5, %p1402_p1 }
  0x56   : > { %1412 = shalt.err (!%p1409_p9)
}
  0x57   : > { %s1413_s12 = scalar_lea.vmem %s1775_s29, 256  ;;  %s1566_s22 = smov [#allocation2]  }
  0x58   : > { %p1414_p12 = scmp.ne.s32.totalorder %s1775_s29, %s1413_s12  ;;  %s1418_s26 = sshll.u32 %s1566_s22, 4  ;;  %s1419_s26 = int_to_ptr.vmem [resolvable:$false] %s1418_s26 }
  0x59   : > { %s1420_s23 = scalar_lea.vmem %s1419_s26, 512  ;;  %p1421_p4 = scmp.lt.s32.totalorder %s1775_s29, %s1419_s26 }
  0x5a   : > { %p1416_p2 = pnand %p1414_p12, %p1400_p0  ;;  %p1422_p13 = scmp.lt.s32.totalorder %s1420_s23, %s1413_s12 }
  0x5c   : > { %p1417_p7 = pneg %p1416_p2  ;;  %p1423_p6 = por %p1422_p13, %p1421_p4 }
  0x5e   : > { %p1424_p10 = pnand %p1423_p6, %p1417_p7 }
  0x60   : > { %1427 = shalt.err (!%p1424_p10)
}
  0x61   : > { %s2126_s18 = smov 8   ;;  %s2127_s25 = smov 128  }
  0x62   : > { %1223 = dma.hbm_to_vmem [thread:$0]  (!%p1777_p11), %s1773_s20, 256, %s1775_s29, %s1781_s13, %s2127_s25, %s2127_s25, %s2126_s18  }
  0x63   : > { %384 = sbr.rel (%p1677_p8) target bundleno = 1172 (0x494), region = 52  ;;  %s1815_s27 = sand.u32 (!%p1677_p8), 1, %s1550_s14  }
  0x64   : > { %s1818_s12 = sshll.u32 (!%p1677_p8), %s1815_s27, 4  ;;  %s387_s30 = scalar_lea.sflag (!%p1677_p8), [#allocation3], %s1815_s27 }
  0x65   : > { %s390_s22 = scalar_lea.vmem (!%p1677_p8), [#allocation2], %s1818_s12  ;;  %p2128_p4 = scmp.ne.s32.totalorder (!%p1677_p8), %s2118_s19, 0 }
  0x6a   : > { %1529 = dma.done.wait (%p2128_p4), %s387_s30, 256  }
  0x6b   : > { %1531 = vsyncadd (%p2128_p4), %s387_s30, 4294967040  ;;  %p2129_p7 = scmp.eq.s32.totalorder %s1656_s17, 0 }
  0x6d   : > { %1533 = dma.done.wait (%p2129_p7), [#allocation6], 1152   ;;  %p2130_p8 = pmov %p2129_p7 }
  0x6e   : > { %p455_p11 = scmp.lt.s32.totalorder %s1656_s17, 1  ;;  %v1303_v3 = vld [vmem:[#allocation5] sm:$0xff]   ;;  %s1567_s19 = smov 4   ;;  %v1568_v4 = vmov 0.0   ;;  %v1304_v5 = vld [vmem:[#allocation5 + $0x8] sm:$0xff]   ;;  %v1305_v6 = vld [vmem:[#allocation5 + $0x10] sm:$0xff]  }
  0x6f   : > { %1535 = vsyncadd (%p2130_p8), [#allocation6], 4294966144  ;;  %1179 = vmatprep.subr.bf16.mxu0 %v1568_v4  ;;  %v1306_v7 = vld [vmem:[#allocation5 + $0x18] sm:$0xff]   ;;  %v1307_v8 = vld [vmem:[#allocation5 + $0x20] sm:$0xff]   ;;  %s2131_s0 = sld [smem:[#allocation18_spill]]  ;;  %vm480_vm0 = vcmask 31744  }
  0x70   : > { %s1832_s21 = scalar_select %p455_p11, %s1656_s17, 1  ;;  %1180 = vmatpush3.bf16.msra.mxu0 %v1303_v3  ;;  %v1308_v9 = vld [vmem:[#allocation5 + $0x28] sm:$0xff]   ;;  %v1309_v13 = vld [vmem:[#allocation5 + $0x30] sm:$0x3f]   ;;  %vm508_vm1 = vcmask 1045504   ;;  %vm485_vm2 = vcmask 1040384  }
  0x71   : > { %1181 = vmatprep.subr.bf16.mxu0 %v1568_v4  ;;  %v594_v16 = vsel %vm508_vm1, %v1309_v13, 0  ;;  %vm1569_vm3 = vmmov 0   ;;  %vm496_vm4 = vcmask 1046528   ;;  %s1570_s30 = smov 72   ;;  %vm520_vm5 = vcmask 293888   ;;  %v655_v54 = vld [vmem:[#allocation7] sm:$0xff] }
  0x72   : > { %s1167_s13 = sshll.u32 %s1832_s21, 4  ;;  %1193 = vmatprep.mubr.msk.bf16.mxu0 %vm1569_vm3, %v1568_v4  ;;  %s1571_s21 = smov 36   ;;  %vm523_vm6 = vcmask 588800   ;;  %vm589_vm7 = vcmask 883712   ;;  %v1141_v47 = vld [vmem:[%s2100_s4] ss:$0 sm:$0xff] }
  0x73   : > { %s464_s26 = scalar_lea.vmem %s2097_s1, %s1167_s13  ;;  %v470_v56 = vld [vmem:[%s390_s22] sm:$0xff]  ;;  %s1572_s29 = smov 64   ;;  %v471_v60 = vld [vmem:[%s390_s22 + $0x8] sm:$0xff]  ;;  %vm780_vm8 = vcmask 1042432   ;;  %vm767_vm9 = vcmask 261120   ;;  %vm815_vm10 = vcmask 1044480  }
  0x74   : > { %v468_v0 = vld [vmem:[%s464_s26] sm:$0xff]  ;;  %v469_v1 = vld [vmem:[%s464_s26 + $0x8] sm:$0xff]  ;;  %1182 = vmatpush3.bf16.msra.mxu0 %v1304_v5  ;;  %v657_v58 = vmul.f32 %v655_v54, %v470_v56  ;;  %s1573_s26 = smov 32   ;;  %s1574_s20 = smov 96   ;;  %vm825_vm11 = vcmask 1043456  }
  0x75   : > { %v1288_v2 = vpack.i.bf16 %v469_v1, %v468_v0  ;;  %1183 = vmatprep.subr.bf16.mxu0 %v1568_v4  ;;  %s459_s25 = scalar_lea.vmem %s2131_s0, %s1167_s13  ;;  %v656_v57 = vld [vmem:[#allocation7 + $0x8] sm:$0xff]  ;;  %v638_v63 = vld [vmem:[%s2101_s5 + $0x8] sm:$0xff]  ;;  %s897_s23 = sand.u32 1, %s1656_s17  }
  0x76   : > { %v466_v10 = vld [vmem:[%s459_s25] sm:$0xff]  ;;  %v467_v11 = vld [vmem:[%s459_s25 + $0x8] sm:$0xff]  ;;  %v658_v61 = vmul.f32 %v656_v57, %v471_v60  ;;  %v640_v1 = vmul.f32 %v638_v63, %v471_v60  ;;  %s1921_s18 = scalar_lea.vmem [#allocation8], %s1818_s12  ;;  %p2132_p1 = scmp.ne.s32.totalorder %s2124_s24, 0 }
  0x77   : > { %1289 = vrot.lane.b32.xlu0 %v1288_v2, %s1567_s19  ;;  %v637_v62 = vld [vmem:[%s2101_s5] sm:$0xff]  ;;  %s916_s25 = sshll.u32 %s1921_s18, 4  ;;  %s1947_s25 = int_to_ptr.vmem [resolvable:$true] %s916_s25 }
  0x78   : > { %1184 = vmatpush3.bf16.msra.mxu0 %v1305_v6  ;;  %v639_v0 = vmul.f32 %v637_v62, %v470_v56 }
  0x79   : > { %1185 = vmatprep.subr.bf16.mxu0 %v1568_v4 }
  0x7c   : > { %1186 = vmatpush3.bf16.msra.mxu0 %v1306_v7 }
  0x7d   : > { %1187 = vmatprep.subr.bf16.mxu0 %v1568_v4 }
  0x80   : > { %1188 = vmatpush3.bf16.msra.mxu0 %v1307_v8 }
  0x81   : > { %1189 = vmatprep.subr.bf16.mxu0 %v1568_v4 }
  0x84   : > { %1190 = vmatpush3.bf16.msra.mxu0 %v1308_v9 }
  0x85   : > { %1191 = vmatprep.subr.bf16.mxu0 %v1568_v4 }
  0x88   : > { %1192 = vmatpush3.bf16.msra.mxu0 %v594_v16  ;;  %v713_v16 = vld [vmem:[%s2103_s7] sm:$0xff] }
  0xe9   : > { %v1290_v12 = vpop.permute.xlu0 %1289 }
  0xea   : > { %v1292_v14 = vunpack.i.h.bf16 %v1290_v12  ;;  %v1291_v15 = vunpack.i.l.bf16 %v1290_v12 }
  0xec   : > { %v481_v17 = vsel %vm480_vm0, %v466_v10, %v1291_v15  ;;  %v482_v18 = vsel %vm480_vm0, %v467_v11, %v1292_v14 }
  0xed   : > { %v486_v19 = vrot.slane %v481_v17, 7  ;;  %v487_v20 = vrot.slane %v482_v18, 7  ;;  %v714_v17 = vld [vmem:[%s2103_s7 + $0x8] sm:$0xff] }
  0xef   : > { %v492_v21 = vsel %vm485_vm2, 0.0, %v486_v19  ;;  %v488_v22 = vsel %vm485_vm2, %v486_v19, %v487_v20  ;;  %v493_v23 = vsel %vm485_vm2, %v487_v20, 0.0 }
  0xf0   : > { %v500_v24 = vrot.slane %v493_v23, 1  ;;  %v509_v25 = vrot.slane %v492_v21, 2  ;;  %v510_v26 = vrot.slane %v488_v22, 2  ;;  %v512_v27 = vrot.slane %v493_v23, 2 }
  0xf1   : > { %v497_v28 = vrot.slane %v492_v21, 1  ;;  %v498_v29 = vrot.slane %v488_v22, 1 }
  0xf2   : > { %v511_v30 = vsel %vm508_vm1, %v509_v25, %v510_v26  ;;  %v513_v31 = vsel %vm508_vm1, %v510_v26, %v512_v27 }
  0xf3   : > { %v1298_v32 = vpack.i.bf16 %v513_v31, %v511_v30  ;;  %v499_v33 = vsel %vm496_vm4, %v497_v28, %v498_v29  ;;  %v501_v34 = vsel %vm496_vm4, %v498_v29, %v500_v24 }
  0xf4   : > { %v1293_v35 = vpack.i.bf16 %v501_v34, %v499_v33 }
  0xf5   : > { %1299 = vrot.lane.b32.xlu1 %v1298_v32, %s1570_s30 }
  0xf6   : > { %1294 = vrot.lane.b32.xlu0 %v1293_v35, %s1571_s21  ;;  %s1955_s21 = scalar_lea.sflag [#allocation10], %s897_s23 }
 0x167   : > { %v1300_v36 = vpop.permute.xlu1 %1299 }
 0x168   : > { %v1302_v37 = vunpack.i.h.bf16 %v1300_v36  ;;  %v1301_v38 = vunpack.i.l.bf16 %v1300_v36  ;;  %v1295_v39 = vpop.permute.xlu0 %1294 }
 0x169   : > { %v1297_v40 = vunpack.i.h.bf16 %v1295_v39  ;;  %v1296_v41 = vunpack.i.l.bf16 %v1295_v39 }
 0x16b   : > { %v522_v42 = vsel %vm520_vm5, %v488_v22, %v1297_v40  ;;  %v521_v43 = vsel %vm520_vm5, %v492_v21, %v1296_v41 }
 0x16c   : > { %v524_v44 = vsel %vm523_vm6, %v521_v43, %v1301_v38  ;;  %v525_v45 = vsel %vm523_vm6, %v522_v42, %v1302_v37 }
 0x16d   : > { %v526_v46 = vpack.c.bf16 %v525_v45, %v524_v44 }
 0x16f   : > { %1194 = vmatmul.mubr.msk.bf16.vlgmr.msra.gmra.mrb[0].mxu0 %vm589_vm7, %v526_v46 }
 0x242   : > { %v630_v48 = vpop.f32.mrb[0].mxu0 }
 0x243   : > { %v1852_v49 = vadd.f32 %v1141_v47, %v630_v48  ;;  %v1195_v50 = vpop.f32.mrb[1].mxu0 }
 0x244   : > { %v633_v51 = vpop.f32.mrb[2].mxu0 }
 0x245   : > { %1310 = vtanh.f32 %v1852_v49  ;;  %v1855_v52 = vadd.f32 %v1141_v47, %v633_v51  ;;  %v1196_v53 = vpop.f32.mrb[3].mxu0  ;;  %v641_v2 = vadd.f32 %v639_v0, %v1852_v49 }
 0x247   : > { %1312 = vtanh.f32 %v1855_v52  ;;  %v642_v3 = vadd.f32 %v640_v1, %v1855_v52  ;;  %v1150_v4 = vmul.f32 -1.442695, %v641_v2 }
 0x249   : > { %v1151_v5 = vmul.f32 -1.442695, %v642_v3  ;;  %1314 = vpow2.f32 %v1150_v4 }
 0x24b   : > { %1316 = vpow2.f32 %v1151_v5 }
 0x24f   : > { %v1311_v55 = vpop.eup %1310 }
 0x250   : > { %695 = vrot.lane.b32.xlu1 %v1311_v55, %s1572_s29 }
 0x251   : > { %v1313_v59 = vpop.eup %1312 }
 0x252   : > { %697 = vrot.lane.b32.xlu0 %v1313_v59, %s1572_s29 }
 0x253   : > { %v1315_v6 = vpop.eup %1314 }
 0x254   : > { %661 = vrot.lane.b32.xlu1 %v657_v58, %s1573_s26  ;;  %v649_v8 = vadd.f32 1.0, %v1315_v6 }
 0x255   : > { %v1317_v7 = vpop.eup %1316 }
 0x256   : > { %663 = vrot.lane.b32.xlu0 %v658_v61, %s1573_s26  ;;  %v650_v9 = vadd.f32 1.0, %v1317_v7  ;;  %1318 = vrcp.f32 %v649_v8 }
 0x258   : > { %683 = vrot.lane.b32.xlu1 %v470_v56, %s1573_s26  ;;  %1320 = vrcp.f32 %v650_v9 }
 0x25a   : > { %685 = vrot.lane.b32.xlu0 %v471_v60, %s1573_s26 }
 0x260   : > { %v1319_v10 = vpop.eup %1318 }
 0x262   : > { %v1321_v13 = vpop.eup %1320 }
 0x2c2   : > { %v696_v11 = vpop.permute.xlu1 %695 }
 0x2c3   : > { %v701_v12 = vmul.f32 %v1319_v10, %v696_v11 }
 0x2c4   : > { %v698_v14 = vpop.permute.xlu0 %697 }
 0x2c5   : > { %v702_v15 = vmul.f32 %v1321_v13, %v698_v14  ;;  %705 = vrot.lane.b32.xlu1 %v701_v12, %s1573_s26 }
 0x2c6   : > { %v662_v18 = vpop.permute.xlu1 %661 }
 0x2c7   : > { %707 = vrot.lane.b32.xlu0 %v702_v15, %s1573_s26  ;;  %v667_v20 = vadd.f32 %v662_v18, %v1852_v49 }
 0x2c8   : > { %v664_v19 = vpop.permute.xlu0 %663 }
 0x2c9   : > { %717 = vrot.lane.b32.xlu1 %v713_v16, %s1573_s26  ;;  %v668_v21 = vadd.f32 %v664_v19, %v1855_v52  ;;  %v1152_v22 = vmul.f32 -1.442695, %v667_v20 }
 0x2ca   : > { %v684_v29 = vpop.permute.xlu1 %683 }
 0x2cb   : > { %719 = vrot.lane.b32.xlu0 %v714_v17, %s1573_s26  ;;  %v1153_v23 = vmul.f32 -1.442695, %v668_v21  ;;  %1322 = vpow2.f32 %v1152_v22 }
 0x2cc   : > { %v686_v31 = vpop.permute.xlu0 %685 }
 0x2cd   : > { %1324 = vpow2.f32 %v1153_v23 }
 0x2d5   : > { %v1323_v24 = vpop.eup %1322 }
 0x2d6   : > { %v675_v26 = vadd.f32 1.0, %v1323_v24 }
 0x2d7   : > { %v1325_v25 = vpop.eup %1324 }
 0x2d8   : > { %v676_v27 = vadd.f32 1.0, %v1325_v25  ;;  %1326 = vrcp.f32 %v675_v26 }
 0x2da   : > { %1328 = vrcp.f32 %v676_v27 }
 0x2e2   : > { %v1327_v28 = vpop.eup %1326 }
 0x2e3   : > { %v689_v32 = vmul.f32 %v1327_v28, %v684_v29 }
 0x2e4   : > { %v1329_v30 = vpop.eup %1328 }
 0x2e5   : > { %v690_v34 = vmul.f32 %v1329_v30, %v686_v31 }
 0x337   : > { %v706_v33 = vpop.permute.xlu1 %705 }
 0x338   : > { %v711_v35 = vadd.f32 %v706_v33, %v689_v32 }
 0x339   : > { %v708_v36 = vpop.permute.xlu0 %707 }
 0x33a   : > { %1330 = vtanh.f32 %v711_v35  ;;  %v712_v37 = vadd.f32 %v708_v36, %v690_v34 }
 0x33b   : > { %v718_v38 = vpop.permute.xlu1 %717 }
 0x33c   : > { %1332 = vtanh.f32 %v712_v37  ;;  %v723_v39 = vmul.f32 %v718_v38, %v711_v35 }
 0x33d   : > { %v720_v40 = vpop.permute.xlu0 %719 }
 0x33e   : > { %v724_v41 = vmul.f32 %v720_v40, %v712_v37  ;;  %727 = vrot.lane.b32.xlu1 %v723_v39, %s1572_s29 }
 0x340   : > { %729 = vrot.lane.b32.xlu0 %v724_v41, %s1572_s29 }
 0x344   : > { %v1331_v42 = vpop.eup %1330 }
 0x345   : > { %751 = vrot.lane.b32.xlu1 %v1331_v42, %s1572_s29 }
 0x346   : > { %v1333_v43 = vpop.eup %1332 }
 0x347   : > { %753 = vrot.lane.b32.xlu0 %v1333_v43, %s1572_s29  ;;  %s1904_s29 = scalar_lea.vmem [#allocation9], %s1818_s12 }
 0x348   : > { %s932_s19 = sshll.u32 %s1904_s29, 4  ;;  %s1918_s19 = int_to_ptr.vmem [resolvable:$true] %s932_s19 }
 0x349   : > { %s1428_s13 = scalar_lea.vmem %s1918_s19, 256 }
 0x34a   : > { %p1429_p0 = scmp.ne.s32.totalorder %s1918_s19, %s1428_s13 }
 0x34c   : > { %p1430_p3 = pnand %p1429_p0, %p2132_p1 }
 0x34e   : > { %p1431_p5 = pneg %p1430_p3 }
 0x3b0   : > { %v728_v44 = vpop.permute.xlu1 %727 }
 0x3b1   : > { %v733_v45 = vadd.f32 %v728_v44, %v1852_v49 }
 0x3b2   : > { %v730_v46 = vpop.permute.xlu0 %729 }
 0x3b3   : > { %v1154_v47 = vmul.f32 -1.442695, %v733_v45  ;;  %v734_v48 = vadd.f32 %v730_v46, %v1855_v52 }
 0x3b5   : > { %1334 = vpow2.f32 %v1154_v47  ;;  %v1155_v50 = vmul.f32 -1.442695, %v734_v48 }
 0x3b7   : > { %1336 = vpow2.f32 %v1155_v50  ;;  %v752_v57 = vpop.permute.xlu1 %751 }
 0x3b9   : > { %v754_v60 = vpop.permute.xlu0 %753 }
 0x3bf   : > { %v1335_v51 = vpop.eup %1334 }
 0x3c0   : > { %v741_v53 = vadd.f32 1.0, %v1335_v51 }
 0x3c1   : > { %v1337_v54 = vpop.eup %1336 }
 0x3c2   : > { %1338 = vrcp.f32 %v741_v53  ;;  %v742_v55 = vadd.f32 1.0, %v1337_v54 }
 0x3c4   : > { %1340 = vrcp.f32 %v742_v55 }
 0x3cc   : > { %v1339_v56 = vpop.eup %1338 }
 0x3cd   : > { %v757_v58 = vmul.f32 %v1339_v56, %v752_v57 }
 0x3ce   : > { %v1341_v59 = vpop.eup %1340 }
 0x3cf   : > { %v781_v49 = vrot.slane %v757_v58, 5  ;;  %v758_v61 = vmul.f32 %v1341_v59, %v754_v60 }
 0x3d1   : > { %v782_v52 = vrot.slane %v758_v61, 5  ;;  %784 = vrot.lane.b32.xlu1 %v781_v49, %s1573_s26 }
 0x3d3   : > { %v783_v62 = vsel %vm780_vm8, %v781_v49, %v782_v52 }
 0x3d4   : > { %786 = vrot.lane.b32.xlu0 %v783_v62, %s1573_s26 }
 0x3d5   : > { %788 = vrot.lane.b32.xlu1 %v782_v52, %s1573_s26 }
 0x3d8   : > { %772 = vrot.lane.b32.xlu0 %v711_v35, %s1574_s20 }
 0x3d9   : > { %774 = vrot.lane.b32.xlu1 %v712_v37, %s1574_s20  ;;  %s1575_s20 = smov [#allocation9]  }
 0x3dc   : > { %761 = vrot.lane.b32.xlu0 %v757_v58, %s1573_s26 }
 0x3dd   : > { %763 = vrot.lane.b32.xlu1 %v758_v61, %s1573_s26  ;;  %s2115_s26 = sshll.u32 %s1656_s17, 8 }
 0x3de   : > { %s1935_s30 = scalar_lea.hbm %s2105_s9, %s2115_s26 }
 0x443   : > { %v785_v63 = vpop.permute.xlu1 %784 }
 0x444   : > { %v1901_v0 = vsel %vm780_vm8, -inf, %v785_v63 }
 0x445   : > { %v797_v2 = vrot.slane %v1901_v0, 1  ;;  %v806_v6 = vrot.slane %v1901_v0, 2  ;;  %v816_v12 = vrot.slane %v1901_v0, 3  ;;  %v826_v20 = vrot.slane %v1901_v0, 4 }
 0x446   : > { %v1907_v1 = vpop.permute.xlu0 %786 }
 0x447   : > { %v798_v3 = vrot.slane %v1907_v1, 1  ;;  %v807_v4 = vrot.slane %v1907_v1, 2  ;;  %v789_v5 = vpop.permute.xlu1 %788  ;;  %v817_v9 = vrot.slane %v1907_v1, 3  ;;  %v827_v16 = vrot.slane %v1907_v1, 4 }
 0x448   : > { %v1916_v7 = vsel %vm780_vm8, %v789_v5, -inf  ;;  %v836_v23 = vrot.slane %v1907_v1, 5 }
 0x449   : > { %v799_v8 = vsel %vm496_vm4, %v797_v2, %v798_v3  ;;  %v800_v10 = vrot.slane %v1916_v7, 1  ;;  %v809_v11 = vrot.slane %v1916_v7, 2  ;;  %v808_v15 = vsel %vm508_vm1, %v806_v6, %v807_v4 }
 0x44a   : > { %v804_v13 = vmax.f32 %v1901_v0, %v799_v8  ;;  %v773_v14 = vpop.permute.xlu0 %772  ;;  %v819_v18 = vrot.slane %v1916_v7, 3  ;;  %v818_v25 = vsel %vm815_vm10, %v816_v12, %v817_v9  ;;  %v829_v26 = vrot.slane %v1916_v7, 4 }
 0x44b   : > { %v801_v17 = vsel %vm496_vm4, %v798_v3, %v800_v10  ;;  %778 = vst.msk [vmem:[%s1904_s29] sm:$0xff] %vm767_vm9, %v773_v14  ;;  %v775_v19 = vpop.permute.xlu1 %774  ;;  %v810_v24 = vsel %vm508_vm1, %v807_v4, %v809_v11 }
 0x44c   : > { %v805_v21 = vmax.f32 %v1907_v1, %v801_v17  ;;  %v813_v22 = vmax.f32 %v804_v13, %v808_v15  ;;  %779 = vst.msk [vmem:[%s1904_s29 + $0x8] sm:$0xff] %vm767_vm9, %v775_v19  ;;  %s1432_s29 = sshll.u32 %s1575_s20, 4  ;;  %s1433_s29 = int_to_ptr.vmem [resolvable:$false] %s1432_s29 }
 0x44d   : > { %s1434_s12 = scalar_lea.vmem %s1433_s29, 512  ;;  %p1435_p9 = scmp.lt.s32.totalorder %s1918_s19, %s1433_s29 }
 0x44e   : > { %p1436_p12 = scmp.lt.s32.totalorder %s1434_s12, %s1428_s13 }
 0x450   : > { %p1437_p2 = por %p1436_p12, %p1435_p9 }
 0x452   : > { %p1438_p13 = pnand %p1437_p2, %p1431_p5 }
 0x454   : > { %1441 = shalt.err (!%p1438_p13)
}
 0x455   : > { %s1442_s23 = scalar_lea.hbm %s1935_s30, 256  ;;  %s1446_s20 = scalar_lea.hbm %s2105_s9, 512 }
 0x456   : > { %p1443_p6 = scmp.ne.s32.totalorder %s1935_s30, %s1442_s23  ;;  %p1447_p7 = scmp.lt.u32.totalorder %s1935_s30, %s2105_s9 }
 0x457   : > { %p1448_p8 = scmp.lt.u32.totalorder %s1446_s20, %s1442_s23  ;;  %p1450_p0 = scmp.lt.u32.totalorder %s1442_s23, %s1935_s30 }
 0x458   : > { %p1444_p10 = pnand %p1443_p6, %p2132_p1 }
 0x459   : > { %p1449_p11 = por %p1448_p8, %p1447_p7 }
 0x45a   : > { %p1445_p4 = pneg %p1444_p10 }
 0x45b   : > { %p1451_p3 = por %p1450_p0, %p1449_p11 }
 0x45d   : > { %p1452_p5 = pnand %p1451_p3, %p1445_p4 }
 0x45f   : > { %1455 = shalt.err (!%p1452_p5)
}
 0x460   : > { %s1576_s13 = smov 128   ;;  %s1577_s12 = smov 8   ;;  %v835_v27 = vrot.slane %v1901_v0, 5  ;;  %v814_v28 = vmax.f32 %v805_v21, %v810_v24  ;;  %v823_v29 = vmax.f32 %v813_v22, %v818_v25  ;;  %v762_v30 = vpop.permute.xlu0 %761  ;;  %v867_v31 = vlaneseq  ;;  %v764_v36 = vpop.permute.xlu1 %763 }
 0x461   : > { %1208 = dma.vmem_to_hbm [thread:$0]  (%p2132_p1), %s1918_s19, 256, %s1935_s30, %s1955_s21, %s1576_s13, %s1576_s13, %s1577_s12   ;;  %v846_v32 = vrot.slane %v1907_v1, 6  ;;  %v820_v33 = vsel %vm815_vm10, %v817_v9, %v819_v18  ;;  %v828_v34 = vsel %vm825_vm11, %v826_v20, %v827_v16  ;;  %v838_v35 = vrot.slane %v1916_v7, 5 }
 0x462   : > { %s2133_s0 = sshll.u32 %s1656_s17, 8  ;;  %768 = vst.msk [vmem:[%s1921_s18] sm:$0xff] %vm767_vm9, %v762_v30  ;;  %v845_v37 = vrot.slane %v1901_v0, 6  ;;  %vm844_vm12 = vcmask 1041408   ;;  %v824_v38 = vmax.f32 %v814_v28, %v820_v33  ;;  %v833_v39 = vmax.f32 %v823_v29, %v828_v34  ;;  %769 = vst.msk [vmem:[%s1921_s18 + $0x8] sm:$0xff] %vm767_vm9, %v764_v36  ;;  %s1456_s30 = scalar_lea.vmem %s1947_s25, 256 }
 0x463   : > { %s1988_s22 = scalar_lea.hbm %s2104_s8, %s2133_s0  ;;  %v837_v40 = vsel %vm780_vm8, %v835_v27, %v836_v23  ;;  %v855_v41 = vrot.slane %v1907_v1, 7  ;;  %v830_v42 = vsel %vm825_vm11, %v827_v16, %v829_v26  ;;  %v848_v43 = vrot.slane %v1916_v7, 6  ;;  %p1457_p9 = scmp.ne.s32.totalorder %s1947_s25, %s1456_s30 }
 0x464   : > { %s1578_s20 = smov [#allocation8]  }
 0x465   : > { %p1458_p12 = pnand %p1457_p9, %p2132_p1  ;;  %s1460_s18 = sshll.u32 %s1578_s20, 4  ;;  %s1461_s18 = int_to_ptr.vmem [resolvable:$false] %s1460_s18 }
 0x466   : > { %s1462_s29 = scalar_lea.vmem %s1461_s18, 512  ;;  %p1463_p13 = scmp.lt.s32.totalorder %s1947_s25, %s1461_s18 }
 0x467   : > { %p1459_p2 = pneg %p1458_p12  ;;  %p1464_p6 = scmp.lt.s32.totalorder %s1462_s29, %s1456_s30 }
 0x469   : > { %p1465_p10 = por %p1464_p6, %p1463_p13 }
 0x46b   : > { %p1466_p4 = pnand %p1465_p10, %p1459_p2 }
 0x46d   : > { %1469 = shalt.err (!%p1466_p4)
}
 0x46e   : > { %s1470_s0 = scalar_lea.hbm %s1988_s22, 256  ;;  %s1474_s20 = scalar_lea.hbm %s2104_s8, 512 }
 0x46f   : > { %p1471_p7 = scmp.ne.s32.totalorder %s1988_s22, %s1470_s0  ;;  %p1475_p0 = scmp.lt.u32.totalorder %s1988_s22, %s2104_s8 }
 0x470   : > { %p1476_p3 = scmp.lt.u32.totalorder %s1474_s20, %s1470_s0  ;;  %p1478_p9 = scmp.lt.u32.totalorder %s1470_s0, %s1988_s22 }
 0x471   : > { %p1472_p8 = pnand %p1471_p7, %p2132_p1 }
 0x472   : > { %p1477_p5 = por %p1476_p3, %p1475_p0 }
 0x473   : > { %p1473_p11 = pneg %p1472_p8 }
 0x474   : > { %p1479_p12 = por %p1478_p9, %p1477_p5 }
 0x476   : > { %p1480_p2 = pnand %p1479_p12, %p1473_p11 }
 0x478   : > { %1483 = shalt.err (!%p1480_p2)
}
 0x479   : > { %s2134_s30 = scalar_lea.sflag [#allocation4], %s1815_s27  ;;  %v834_v44 = vmax.f32 %v824_v38, %v830_v42  ;;  %v842_v45 = vmax.f32 %v833_v39, %v837_v40  ;;  %v868_v46 = vshrl.u32 %v867_v31, 7  ;;  %v854_v47 = vrot.slane %v1901_v0, 7  ;;  %s1136_s19 = sshll.u32 %s1815_s27, 2 }
 0x47a   : > { %1207 = dma.vmem_to_hbm [thread:$0]  (%p2132_p1), %s1947_s25, 256, %s1988_s22, %s2134_s30, %s1576_s13, %s1576_s13, %s1577_s12   ;;  %v839_v48 = vsel %vm780_vm8, %v836_v23, %v838_v35  ;;  %v847_v50 = vsel %vm844_vm12, %v845_v37, %v846_v32  ;;  %v857_v51 = vrot.slane %v1916_v7, 7  ;;  %v849_v56 = vsel %vm844_vm12, %v846_v32, %v848_v43 }
 0x47b   : > { %v843_v53 = vmax.f32 %v834_v44, %v839_v48  ;;  %v852_v54 = vmax.f32 %v842_v45, %v847_v50  ;;  %v856_v55 = vsel %vm485_vm2, %v854_v47, %v855_v41  ;;  %v869_v59 = vsub.s32 0, %v868_v46  ;;  %s1163_s25 = sshll.u32 %s1656_s17, 6  ;;  %s454_s27 = scalar_lea.vmem [#allocation11], %s1136_s19 }
 0x47c   : > { %v858_v60 = vsel %vm485_vm2, %v855_v41, %v857_v51  ;;  %vm883_vm13 = vcmask 1041409   ;;  %vm885_vm14 = vcmask 1042434   ;;  %s948_s13 = sshll.u32 %s454_s27, 4  ;;  %vm887_vm15 = vcmask 1043459   ;;  %s2050_s29 = scalar_lea.hbm %s2106_s10, %s1163_s25  ;;  %s2052_s13 = int_to_ptr.vmem [resolvable:$true] %s948_s13 }
 0x47d   : > { %v853_v57 = vmax.f32 %v843_v53, %v849_v56  ;;  %v861_v58 = vmax.f32 %v852_v54, %v856_v55  ;;  %vm890_vm0 = vcmask 257024   ;;  %s1484_s17 = scalar_lea.vmem %s2052_s13, 64  ;;  %s1579_s0 = smov [#allocation11]  }
 0x47e   : > { %p1485_p13 = scmp.ne.s32.totalorder %s2052_s13, %s1484_s17  ;;  %s1488_s26 = sshll.u32 %s1579_s0, 4  ;;  %s1489_s26 = int_to_ptr.vmem [resolvable:$false] %s1488_s26 }
 0x47f   : > { %v862_v49 = vmax.f32 %v853_v57, %v858_v60  ;;  %v865_v61 = vcombine.high %v861_v58, %v861_v58  ;;  %v870_v62 = vrot.slane %v861_v58, %v869_v59  ;;  %s1490_s23 = scalar_lea.vmem %s1489_s26, 128  ;;  %p1491_p4 = scmp.lt.s32.totalorder %s2052_s13, %s1489_s26 }
 0x480   : > { %p1486_p6 = pnand %p1485_p13, %p2132_p1  ;;  %p1492_p7 = scmp.lt.s32.totalorder %s1490_s23, %s1484_s17 }
 0x481   : > { %v866_v52 = vcombine.high %v862_v49, %v862_v49  ;;  %v874_v63 = vrot.slane %v865_v61, %v869_v59  ;;  %v878_v0 = vrot.slane %v862_v49, %v869_v59 }
 0x482   : > { %p1487_p10 = pneg %p1486_p6  ;;  %p1493_p8 = por %p1492_p7, %p1491_p4 }
 0x483   : > { %v882_v1 = vrot.slane %v866_v52, %v869_v59  ;;  %v884_v2 = vsel %vm883_vm13, %v874_v63, %v870_v62 }
 0x484   : > { %v886_v3 = vsel %vm885_vm14, %v878_v0, %v884_v2  ;;  %p1494_p11 = pnand %p1493_p8, %p1487_p10 }
 0x485   : > { %v888_v4 = vsel %vm887_vm15, %v882_v1, %v886_v3 }
 0x486   : > { %891 = vst.msk [vmem:[%s454_s27] sm:$0xf] %vm890_vm0, %v888_v4 }
 0x487   : > { %1497 = shalt.err (!%p1494_p11)
}
 0x488   : > { %s1498_s20 = scalar_lea.hbm %s2050_s29, 64  ;;  %s1502_s19 = scalar_lea.hbm %s2106_s10, 128 }
 0x489   : > { %p1499_p0 = scmp.ne.s32.totalorder %s2050_s29, %s1498_s20  ;;  %p1503_p9 = scmp.lt.u32.totalorder %s2050_s29, %s2106_s10 }
 0x48a   : > { %p1504_p12 = scmp.lt.u32.totalorder %s1502_s19, %s1498_s20  ;;  %p1506_p13 = scmp.lt.u32.totalorder %s1498_s20, %s2050_s29 }
 0x48b   : > { %p1500_p3 = pnand %p1499_p0, %p2132_p1 }
 0x48c   : > { %p1505_p2 = por %p1504_p12, %p1503_p9 }
 0x48d   : > { %p1501_p5 = pneg %p1500_p3 }
 0x48e   : > { %p1507_p6 = por %p1506_p13, %p1505_p2 }
 0x490   : > { %p1508_p10 = pnand %p1507_p6, %p1501_p5 }
 0x492   : > { %1511 = shalt.err (!%p1508_p10)
}
 0x493   : > { %1209 = dma.vmem_to_hbm [thread:$0]  (%p2132_p1), %s2052_s13, 64, %s2050_s29, %s1955_s21  }
 0x494 PF: > { %s2135_s12 = sld [smem:[#allocation16_spill]]  ;;  %s2136_s22 = sld [smem:[#allocation17_spill]] }
 0x495   : > { %p2138_p7 = scmp.ge.s32.totalorder %s1558_s16, 2 }
 0x49a   : > { %s960_s17 = sand.u32 1, %s2135_s12   ;;  %p2137_p4 = scmp.ne.s32.totalorder %s2136_s22, 0 }
 0x49b   : > { %s961_s0 = scalar_lea.sflag [#allocation4], %s960_s17 }
 0x49c   : > { %p1225_p8 = pnand %p2138_p7, %p2137_p4 }
 0x49e   : > { %1537 = dma.done.wait (!%p1225_p8), %s961_s0, 256  }
 0x49f   : > { %1539 = vsyncadd (!%p1225_p8), %s961_s0, 4294967040  ;;  %s2139_s26 = sadd.s32 4294967294, %s1558_s16  }
 0x4a0   : > { %s969_s23 = sand.u32 1, %s2139_s26  }
 0x4a1   : > { %s970_s20 = scalar_lea.sflag [#allocation10], %s969_s23 }
 0x4a2   : > { %1541 = dma.done.wait (!%p1225_p8), %s970_s20, 320  }
 0x4a3   : > { %1543 = vsyncadd (!%p1225_p8), %s970_s20, 4294966976  ;;  %p28_p1 = scmp.ge.s32.totalorder %s1750_s28, 4   ;;  %s2140_s13 = smov %s1550_s14 }
 0x4a4   : > { %s2141_s14 = smov %s1554_s15  ;;  %s2142_s15 = smov %s1759_s11 }
 0x4a5   : > { %s2143_s16 = smov %s1750_s28  ;;  %30 = sbr.rel (!%p28_p1) target bundleno = 10 (0xa), region = 143 }
 0x4ac   :  { %984 = vsyncpa [#allocation3], 1 }
 0x4ad   :  { %986 = vsyncpa [#allocation3 + $0x1], 1 }
 0x4ae   :  { %987 = vsyncpa [#allocation6], 1 }
 0x4af   :  { %988 = vsyncpa [#allocation4], 1 }
 0x4b0   :  { %990 = vsyncpa [#allocation4 + $0x1], 1 }
 0x4b1   :  { %991 = vsyncpa [#allocation10], 1 }
 0x4b2   :  { %993 = vsyncpa [#allocation10 + $0x1], 1 }

</bundles_post_ra>
